<compile_context>
chip_gen: v7x
topology: tpu7x:2x2x1
jax: 0.10.0
libtpu: 0.0.40
codegen_flags: <defaults>
</compile_context>

<pallas_src>
import functools

import jax
import jax.numpy as jnp
from jax.experimental import pallas as pl
from jax.experimental.pallas import tpu as pltpu


def _feature_compressor_kernel(x_ref, w_ref, b_ref, g_ref, beta_ref, o_ref, *, eps):
    # x_ref:    [TM, K]  streamed input tile
    # w_ref:    [K, N]   linear weight (transposed vs torch), VMEM-resident
    # b_ref:    [1, N]   linear bias
    # g_ref:    [1, N]   layernorm gamma
    # beta_ref: [1, N]   layernorm beta
    # o_ref:    [TM, N]  output tile
    # Linear (MXU) with f32 accumulation + bias.
    y = jnp.dot(x_ref[...], w_ref[...], preferred_element_type=jnp.float32)
    y = y + b_ref[...].astype(jnp.float32)

    # ReLU (VPU, f32).
    h = jnp.maximum(y, 0.0)

    # LayerNorm over last axis (biased variance, matching torch.nn.LayerNorm).
    mean = jnp.mean(h, axis=-1, keepdims=True)
    centered = h - mean
    var = jnp.mean(centered * centered, axis=-1, keepdims=True)
    inv = jax.lax.rsqrt(var + eps)
    o_ref[...] = (
        centered * inv * g_ref[...].astype(jnp.float32)
        + beta_ref[...].astype(jnp.float32)
    ).astype(o_ref.dtype)


def _vmem_budget_bytes():
    """Generation-aware budget for the explicitly sized tiles (not the full VMEM)."""
    phys = 64 * 1024 * 1024  # conservative default = v7x per-core VMEM
    try:
        cap = getattr(pltpu.get_tpu_info(), "vmem_capacity_bytes", None)
        if cap:
            phys = int(cap)
    except Exception:
        pass
    # ~40% of physical for our tiles, capped so limit+headroom stays safe everywhere.
    return max(12 * 1024 * 1024, min(26 * 1024 * 1024, (2 * phys) // 5))


def _choose_tm(M, K, N, in_itemsize, w_itemsize, out_itemsize, vmem_budget):
    """Pick the M-tile size (rows per grid step)."""
    # Sublane multiple for the narrowest streamed dtype: 8 f32, 16 bf16, 32 int8/fp8.
    sub = max(8, 32 // min(in_itemsize, out_itemsize))

    # VMEM per TM row: double-buffered x/out tiles + ~3 f32 epilogue temporaries.
    per_row = 2 * K * in_itemsize + 2 * N * out_itemsize + 3 * N * 4
    # Resident operands (pipeline still allocates 2 buffers for constant-index blocks).
    resident = 2 * (K * N * w_itemsize + 3 * N * 4)

    avail = vmem_budget - resident
    if avail < per_row * sub:
        # TODO(synk): weight alone nearly fills VMEM; would need K/N tiling here.
        return sub
    tm_vmem = avail // per_row

    # Stream >= ~4 MiB of x+out per grid step to amortize ~0.35us per-step overhead.
    stream_per_row = K * in_itemsize + N * out_itemsize
    tm_stream = pl.cdiv(4 * 1024 * 1024, stream_per_row)
    # ...but keep >= ~8 steps when M allows (>= 2 needed to feed both v7x TCs),
    # never shrinking a step below ~1 MiB of streamed bytes.
    tm_floor = max(sub, pl.cdiv(1 * 1024 * 1024, stream_per_row))
    tm_split = pl.cdiv(M, 8)

    tm = min(tm_stream, tm_vmem)
    if tm_split < tm:
        tm = min(tm_vmem, max(tm_floor, tm_split))

    # Sublane-dense rounding; if a single tile covers all rows, use the exact row
    # count (block dim == full array dim is always a legal tiling).
    tm = max(sub, (tm // sub) * sub)
    if tm >= M:
        tm = M
    return tm


def feature_compressor(x, w, b, gamma, beta, *, eps=1e-5):
    """x: [..., K]; w: [K, N]; b, gamma, beta: [N]. Returns [..., N] in x.dtype."""
    *lead, K = x.shape
    N = w.shape[1]
    M = 1
    for d in lead:
        M *= d

    x2d = x.reshape(M, K)                      # native dtype, no pad
    b2d = b.reshape(1, N)
    g2d = gamma.reshape(1, N)
    beta2d = beta.reshape(1, N)

    in_itemsize = jnp.dtype(x2d.dtype).itemsize
    w_itemsize = jnp.dtype(w.dtype).itemsize
    out_itemsize = in_itemsize                 # output keeps the input dtype

    vmem_budget = _vmem_budget_bytes()
    tm = _choose_tm(M, K, N, in_itemsize, w_itemsize, out_itemsize, vmem_budget)
    grid_m = pl.cdiv(M, tm)                    # ragged last block is masked by Pallas

    kernel = functools.partial(_feature_compressor_kernel, eps=eps)

    cost = pl.CostEstimate(
        flops=2 * M * K * N,
        transcendentals=M,  # one rsqrt per row
        bytes_accessed=(
            M * K * in_itemsize
            + K * N * w_itemsize
            + 3 * N * jnp.dtype(b.dtype).itemsize
            + M * N * out_itemsize
        ),
    )

    vmem_limit = min(32 * 1024 * 1024, vmem_budget + 6 * 1024 * 1024)

    out = pl.pallas_call(
        kernel,
        out_shape=jax.ShapeDtypeStruct((M, N), x.dtype),
        grid_spec=pltpu.PrefetchScalarGridSpec(
            num_scalar_prefetch=0,
            grid=(grid_m,),
            in_specs=[
                pl.BlockSpec((tm, K), lambda i: (i, 0)),   # streamed x tiles
                pl.BlockSpec((K, N), lambda i: (0, 0)),    # resident weight
                pl.BlockSpec((1, N), lambda i: (0, 0)),    # resident bias
                pl.BlockSpec((1, N), lambda i: (0, 0)),    # resident gamma
                pl.BlockSpec((1, N), lambda i: (0, 0)),    # resident beta
            ],
            out_specs=pl.BlockSpec((tm, N), lambda i: (i, 0)),
        ),
        compiler_params=pltpu.CompilerParams(
            dimension_semantics=("parallel",),
            vmem_limit_bytes=vmem_limit,
        ),
        cost_estimate=cost,
    )(x2d, w, b2d, g2d, beta2d)

    return out.reshape(*lead, N)


def _reference(x, w, b, gamma, beta, eps=1e-5):
    y = jnp.maximum(x @ w + b, 0.0)
    mean = jnp.mean(y, axis=-1, keepdims=True)
    var = jnp.mean((y - mean) ** 2, axis=-1, keepdims=True)
    return (y - mean) / jnp.sqrt(var + eps) * gamma + beta


if __name__ == "__main__":
    key = jax.random.PRNGKey(0)
    B, S, INPUT_DIM, COMPRESSED_DIM = 2, 8, 32, 128

    k_x, k_w, k_b = jax.random.split(key, 3)
    x = jax.random.normal(k_x, (B, S, INPUT_DIM), dtype=jnp.float32)

    # Deterministic parameter init (synthetic, not a checkpoint load).
    bound = 1.0 / (INPUT_DIM ** 0.5)
    w = jax.random.uniform(
        k_w, (INPUT_DIM, COMPRESSED_DIM), minval=-bound, maxval=bound,
        dtype=jnp.float32)
    b = jax.random.uniform(
        k_b, (COMPRESSED_DIM,), minval=-bound, maxval=bound, dtype=jnp.float32)
    gamma = jnp.ones((COMPRESSED_DIM,), dtype=jnp.float32)
    beta = jnp.zeros((COMPRESSED_DIM,), dtype=jnp.float32)

    out = feature_compressor(x, w, b, gamma, beta)
    out = jax.block_until_ready(out)

    ref = _reference(x, w, b, gamma, beta)
    assert out.shape == (B, S, COMPRESSED_DIM)
    assert jnp.allclose(out, ref, atol=1e-4, rtol=1e-4)

    print("KERNEL_OK")
</pallas_src>

<mosaic_0001>
module attributes {stable_mosaic.version = 11 : i64} {
  func.func @_feature_compressor_kernel(%arg0: i32, %arg1: memref<16x32xf32, #tpu.memory_space<vmem>>, %arg2: memref<32x128xf32, #tpu.memory_space<vmem>>, %arg3: memref<1x128xf32, #tpu.memory_space<vmem>>, %arg4: memref<1x128xf32, #tpu.memory_space<vmem>>, %arg5: memref<1x128xf32, #tpu.memory_space<vmem>>, %arg6: memref<16x128xf32, #tpu.memory_space<vmem>>) attributes {dimension_semantics = [#tpu.dimension_semantics<parallel>], iteration_bounds = array<i64: 1>, scalar_prefetch = 0 : i64, scratch_operands = 0 : i64, tpu.core_type = #tpu.core_type<tc>, window_params = [{transform_indices = @transform_0, window_bounds = array<i64: 16, 32>}, {pipeline_mode = #tpu.pipeline_mode<synchronous>, transform_indices = @transform_1, window_bounds = array<i64: 32, 128>}, {pipeline_mode = #tpu.pipeline_mode<synchronous>, transform_indices = @transform_2, window_bounds = array<i64: 1, 128>}, {pipeline_mode = #tpu.pipeline_mode<synchronous>, transform_indices = @transform_3, window_bounds = array<i64: 1, 128>}, {pipeline_mode = #tpu.pipeline_mode<synchronous>, transform_indices = @transform_4, window_bounds = array<i64: 1, 128>}, {transform_indices = @transform_5, window_bounds = array<i64: 16, 128>}]} {
    %c0 = arith.constant 0 : index
    %c0_0 = arith.constant 0 : index
    %0 = vector.load %arg1[%c0, %c0_0] : memref<16x32xf32, #tpu.memory_space<vmem>>, vector<16x32xf32>
    %c0_1 = arith.constant 0 : index
    %c0_2 = arith.constant 0 : index
    %1 = vector.load %arg2[%c0_1, %c0_2] : memref<32x128xf32, #tpu.memory_space<vmem>>, vector<32x128xf32>
    %cst = arith.constant dense<0.000000e+00> : vector<16x128xf32>
    %2 = tpu.matmul %0, %1, %cst {dimension_numbers = #tpu.dot_dimension_numbers<[1], [0], [0], [1], [0, 0, 1, 1], [], []>} : vector<16x32xf32>, vector<32x128xf32>, vector<16x128xf32> -> vector<16x128xf32>
    %c0_3 = arith.constant 0 : index
    %c0_4 = arith.constant 0 : index
    %3 = vector.load %arg3[%c0_3, %c0_4] : memref<1x128xf32, #tpu.memory_space<vmem>>, vector<1x128xf32>
    %4 = vector.broadcast %3 : vector<1x128xf32> to vector<16x128xf32>
    %5 = arith.addf %2, %4 : vector<16x128xf32>
    %cst_5 = arith.constant 0.000000e+00 : f32
    %6 = vector.broadcast %cst_5 : f32 to vector<16x128xf32>
    %7 = arith.maximumf %5, %6 : vector<16x128xf32>
    %cst_6 = arith.constant dense<0.000000e+00> : vector<16xf32>
    %8 = vector.multi_reduction <add>, %7, %cst_6 [1] : vector<16x128xf32> to vector<16xf32>
    %9 = vector.shape_cast %8 : vector<16xf32> to vector<16x1xf32>
    %cst_7 = arith.constant 1.280000e+02 : f32
    %10 = vector.broadcast %cst_7 : f32 to vector<16x1xf32>
    %11 = arith.divf %9, %10 : vector<16x1xf32>
    %12 = vector.broadcast %11 : vector<16x1xf32> to vector<16x128xf32>
    %13 = arith.subf %7, %12 : vector<16x128xf32>
    %14 = arith.mulf %13, %13 : vector<16x128xf32>
    %cst_8 = arith.constant dense<0.000000e+00> : vector<16xf32>
    %15 = vector.multi_reduction <add>, %14, %cst_8 [1] : vector<16x128xf32> to vector<16xf32>
    %16 = vector.shape_cast %15 : vector<16xf32> to vector<16x1xf32>
    %cst_9 = arith.constant 1.280000e+02 : f32
    %17 = vector.broadcast %cst_9 : f32 to vector<16x1xf32>
    %18 = arith.divf %16, %17 : vector<16x1xf32>
    %cst_10 = arith.constant 9.99999974E-6 : f32
    %19 = vector.broadcast %cst_10 : f32 to vector<16x1xf32>
    %20 = arith.addf %18, %19 : vector<16x1xf32>
    %21 = math.rsqrt %20 : vector<16x1xf32>
    %22 = vector.broadcast %21 : vector<16x1xf32> to vector<16x128xf32>
    %23 = arith.mulf %13, %22 : vector<16x128xf32>
    %c0_11 = arith.constant 0 : index
    %c0_12 = arith.constant 0 : index
    %24 = vector.load %arg4[%c0_11, %c0_12] : memref<1x128xf32, #tpu.memory_space<vmem>>, vector<1x128xf32>
    %25 = vector.broadcast %24 : vector<1x128xf32> to vector<16x128xf32>
    %26 = arith.mulf %23, %25 : vector<16x128xf32>
    %c0_13 = arith.constant 0 : index
    %c0_14 = arith.constant 0 : index
    %27 = vector.load %arg5[%c0_13, %c0_14] : memref<1x128xf32, #tpu.memory_space<vmem>>, vector<1x128xf32>
    %28 = vector.broadcast %27 : vector<1x128xf32> to vector<16x128xf32>
    %29 = arith.addf %26, %28 : vector<16x128xf32>
    %c0_15 = arith.constant 0 : index
    %c0_16 = arith.constant 0 : index
    %30 = vector.load %arg6[%c0_15, %c0_16] : memref<16x128xf32, #tpu.memory_space<vmem>>, vector<16x128xf32>
    tpu.vector_store %arg6[%c0_15, %c0_16], %29 {strides = array<i32>} : memref<16x128xf32, #tpu.memory_space<vmem>>, vector<16x128xf32>,
    return
  }
  func.func @transform_0(%arg0: i32) -> (i32, i32) {
    %c0_i32 = arith.constant 0 : i32
    %c0_i32_0 = arith.constant 0 : i32
    return %arg0, %c0_i32 : i32, i32
  }
  func.func @transform_1(%arg0: i32) -> (i32, i32) {
    %c0_i32 = arith.constant 0 : i32
    %c0_i32_0 = arith.constant 0 : i32
    %c0_i32_1 = arith.constant 0 : i32
    return %c0_i32, %c0_i32_0 : i32, i32
  }
  func.func @transform_2(%arg0: i32) -> (i32, i32) {
    %c0_i32 = arith.constant 0 : i32
    %c0_i32_0 = arith.constant 0 : i32
    %c0_i32_1 = arith.constant 0 : i32
    return %c0_i32, %c0_i32_0 : i32, i32
  }
  func.func @transform_3(%arg0: i32) -> (i32, i32) {
    %c0_i32 = arith.constant 0 : i32
    %c0_i32_0 = arith.constant 0 : i32
    %c0_i32_1 = arith.constant 0 : i32
    return %c0_i32, %c0_i32_0 : i32, i32
  }
  func.func @transform_4(%arg0: i32) -> (i32, i32) {
    %c0_i32 = arith.constant 0 : i32
    %c0_i32_0 = arith.constant 0 : i32
    %c0_i32_1 = arith.constant 0 : i32
    return %c0_i32, %c0_i32_0 : i32, i32
  }
  func.func @transform_5(%arg0: i32) -> (i32, i32) {
    %c0_i32 = arith.constant 0 : i32
    %c0_i32_0 = arith.constant 0 : i32
    return %arg0, %c0_i32 : i32, i32
  }
}

</mosaic_0001>

<bundles_post_ra>
// kernel: tpu_custom_call.1
= control target key start
LH: loop header
LB: loop body
LE: loop exit
PB: predicated region body
PF: predicated region fallthrough
CT: control target
= control target key end

     0   :  { %10 = vsyncpa [#allocation3], 0  ;;  %s407_s0 = inlined_call_operand.hbm [shape: f32[16,32], index: 0, kind: input, shape index: {}]   ;;  %s408_s1 = inlined_call_operand.hbm [shape: f32[32,128], index: 1, kind: input, shape index: {}]   ;;  %s409_s2 = inlined_call_operand.vmem [shape: f32[1,128], index: 2, kind: input, shape index: {}]   ;;  %s410_s3 = inlined_call_operand.vmem [shape: f32[1,128], index: 3, kind: input, shape index: {}]   ;;  %s411_s4 = inlined_call_operand.vmem [shape: f32[1,128], index: 4, kind: input, shape index: {}]   ;;  %s412_s5 = inlined_call_operand.hbm [shape: f32[16,128], index: 5, kind: output, shape index: {}]  }
   0x1   :  { %11 = vsyncpa [#allocation6], 0 }
   0x2   :  { %12 = vsyncpa [#allocation4], 0  ;;  %s318_s18 = smov [#allocation2]   ;;  %s246_s22 = scalar_lea.hbm %s407_s0, 256 }
   0x3   :  { %s18_s19 = sshll.u32 %s318_s18, 4  ;;  %p247_p0 = scmp.ne.s32.totalorder %s407_s0, %s246_s22  ;;  %s19_s19 = int_to_ptr.vmem [resolvable:$true] %s18_s19 }
   0x4   :  { %p250_p1 = scmp.lt.u32.totalorder %s246_s22, %s407_s0 }
   0x6   :  { %p252_p2 = pnand %p250_p1, %p247_p0 }
   0x8   :  { %255 = shalt.err (!%p252_p2)
}
   0x9   :  { %s256_s27 = scalar_lea.vmem %s19_s19, 256  ;;  %p261_p4 = scmp.lt.s32.totalorder %s19_s19, %s19_s19 }
   0xa   :  { %p257_p3 = scmp.ne.s32.totalorder %s19_s19, %s256_s27  ;;  %p262_p5 = scmp.lt.s32.totalorder %s256_s27, %s256_s27 }
   0xc   :  { %p263_p6 = por %p262_p5, %p261_p4 }
   0xe   :  { %p264_p7 = pnand %p263_p6, %p257_p3 }
  0x10   :  { %267 = shalt.err (!%p264_p7)
}
  0x11   :  { %s319_s28 = smov 128   ;;  %s320_s29 = smov 8  }
  0x12   :  { %24 = dma.hbm_to_vmem [thread:$0]  %s407_s0, 256, %s19_s19, [#allocation3], %s319_s28, %s319_s28, %s320_s29  }
  0x13   :  { %s321_s7 = smov [#allocation5]   ;;  %s268_s11 = scalar_lea.hbm %s408_s1, 512 }
  0x14   :  { %s30_s8 = sshll.u32 %s321_s7, 4  ;;  %p269_p8 = scmp.ne.s32.totalorder %s408_s1, %s268_s11  ;;  %s31_s8 = int_to_ptr.vmem [resolvable:$true] %s30_s8 }
  0x15   :  { %p272_p9 = scmp.lt.u32.totalorder %s268_s11, %s408_s1 }
  0x17   :  { %p274_p10 = pnand %p272_p9, %p269_p8 }
  0x19   :  { %277 = shalt.err (!%p274_p10)
}
  0x1a   :  { %s278_s16 = scalar_lea.vmem %s31_s8, 512  ;;  %p283_p12 = scmp.lt.s32.totalorder %s31_s8, %s31_s8 }
  0x1b   :  { %p279_p11 = scmp.ne.s32.totalorder %s31_s8, %s278_s16  ;;  %p284_p13 = scmp.lt.s32.totalorder %s278_s16, %s278_s16 }
  0x1d   :  { %p285_p0 = por %p284_p13, %p283_p12 }
  0x1f   :  { %p286_p1 = pnand %p285_p0, %p279_p11 }
  0x21   :  { %289 = shalt.err (!%p286_p1)
}
  0x22   :  { %36 = dma.hbm_to_vmem [thread:$0]  %s408_s1, 512, %s31_s8, [#allocation6], %s319_s28, %s319_s28, %s320_s29  }
  0x23   :  { %312 = dma.done.wait [#allocation3], 256  }
  0x24   :  { %313 = vsyncadd [#allocation3], 4294967040 }
  0x25   :  { %314 = dma.done.wait [#allocation6], 512  }
  0x26   :  { %315 = vsyncadd [#allocation6], 4294966784  ;;  %vm62_vm0 = vcmask 261120   ;;  %v51_v0 = vld [vmem:[#allocation5] sm:$0xff]  ;;  %v52_v1 = vld [vmem:[#allocation5 + $0x8] sm:$0xff]  ;;  %s322_s22 = smov [#allocation7]  }
  0x27   :  { %v53_v2 = vld [vmem:[#allocation5 + $0x10] sm:$0xff]  ;;  %v229_v3 = vpack.c.bf16 %v52_v1, %v51_v0  ;;  %v54_v4 = vld [vmem:[#allocation5 + $0x18] sm:$0xff]  ;;  %s194_s23 = sshll.u32 %s322_s22, 4  ;;  %s195_s23 = int_to_ptr.vmem [resolvable:$true] %s194_s23 }
  0x28   :  { %v49_v5 = vld [vmem:[#allocation2] sm:$0xff]  ;;  %v233_v6 = vpack.c.bf16 %v54_v4, %v53_v2  ;;  %v50_v7 = vld [vmem:[#allocation2 + $0x8] sm:$0xff]  ;;  %s290_s24 = scalar_lea.vmem %s195_s23, 256  ;;  %p295_p3 = scmp.lt.s32.totalorder %s195_s23, %s195_s23 }
  0x29   :  { %226 = vmatprep.mubr.msk.f32.mxu0 %vm62_vm0, %v49_v5  ;;  %230 = vmatprep.subr.bf16.mxu0 %v229_v3  ;;  %v207_v8 = vld [vmem:[%s409_s2] ss:$0 sm:$0xff]  ;;  %p291_p2 = scmp.ne.s32.totalorder %s195_s23, %s290_s24  ;;  %p296_p4 = scmp.lt.s32.totalorder %s290_s24, %s290_s24 }
  0x2a   :  { %232 = vmatpush3.bf16.msra.mxu0 %v229_v3  ;;  %v210_v30 = vld [vmem:[%s410_s3] ss:$0 sm:$0xff] }
  0x2b   :  { %234 = vmatprep.subr.bf16.mxu0 %v233_v6  ;;  %v211_v32 = vld [vmem:[%s411_s4] ss:$0 sm:$0xff]  ;;  %p297_p5 = por %p296_p4, %p295_p3 }
  0x2d   :  { %p298_p6 = pnand %p297_p5, %p291_p2 }
  0x2e   :  { %236 = vmatpush3.bf16.msra.mxu0 %v233_v6 }
  0x31   :  { %227 = vmatmul.mubr.msk.f32.vlgmr.msra.gmra.mrb[0].mxu0 %vm62_vm0, %v50_v7 }
 0x104   :  { %v228_v9 = vpop.f32.mrb[0].mxu0 }
 0x105   :  { %v135_v10 = vpop.f32.mrb[1].mxu0  ;;  %v141_v12 = vadd.f32 %v228_v9, %v207_v8 }
 0x106   :  { %v136_v11 = vadd.f32 %v207_v8, %v135_v10 }
 0x107   :  { %v145_v14 = vmax.f32 %v141_v12, 0.0 }
 0x108   :  { %v144_v13 = vmax.f32 %v136_v11, 0.0 }
 0x10a   :  { %146 = vadd.xlane.f32.xlu0 %v144_v13 }
 0x10e   :  { %148 = vadd.xlane.f32.xlu0 %v145_v14 }
 0x197   :  { %v147_v15 = vpop.xlane.xlu0 %146 }
 0x198   :  { %v151_v16 = vmul.f32 0.0078125, %v147_v15 }
 0x19a   :  { %v153_v17 = vsub.f32 %v144_v13, %v151_v16 }
 0x19b   :  { %v149_v18 = vpop.xlane.xlu0 %148 }
 0x19c   :  { %v152_v19 = vmul.f32 0.0078125, %v149_v18  ;;  %v155_v20 = vmul.f32 %v153_v17, %v153_v17 }
 0x19e   :  { %v154_v21 = vsub.f32 %v145_v14, %v152_v19  ;;  %157 = vadd.xlane.f32.xlu1 %v155_v20 }
 0x1a0   :  { %v156_v22 = vmul.f32 %v154_v21, %v154_v21 }
 0x1a2   :  { %159 = vadd.xlane.f32.xlu1 %v156_v22 }
 0x22b   :  { %v158_v23 = vpop.xlane.xlu1 %157 }
 0x22c   :  { %v161_v24 = vmul.f32 0.0078125, %v158_v23 }
 0x22e   :  { %v163_v25 = vadd.f32 1e-05, %v161_v24 }
 0x22f   :  { %v160_v26 = vpop.xlane.xlu1 %159 }
 0x230   :  { %242 = vrsqrt.f32 %v163_v25  ;;  %v162_v27 = vmul.f32 0.0078125, %v160_v26 }
 0x232   :  { %v164_v28 = vadd.f32 1e-05, %v162_v27 }
 0x234   :  { %244 = vrsqrt.f32 %v164_v28 }
 0x23a   :  { %v243_v29 = vpop.eup %242 }
 0x23b   :  { %v167_v31 = vmul.f32 %v243_v29, %v153_v17 }
 0x23d   :  { %v176_v33 = vmul.f32 %v210_v30, %v167_v31 }
 0x23e   :  { %v245_v34 = vpop.eup %244 }
 0x23f   :  { %v168_v35 = vmul.f32 %v245_v34, %v154_v21  ;;  %v185_v36 = vadd.f32 %v211_v32, %v176_v33 }
 0x241   :  { %v177_v37 = vmul.f32 %v210_v30, %v168_v35  ;;  %187 = vst [vmem:[#allocation7] sm:$0xff] %v185_v36 }
 0x243   :  { %v186_v38 = vadd.f32 %v211_v32, %v177_v37 }
 0x245   :  { %188 = vst [vmem:[#allocation7 + $0x8] sm:$0xff] %v186_v38 }
 0x246   :  { %301 = shalt.err (!%p298_p6)
}
 0x247   :  { %s302_s25 = scalar_lea.hbm %s412_s5, 256 }
 0x248   :  { %p303_p7 = scmp.ne.s32.totalorder %s412_s5, %s302_s25  ;;  %p306_p8 = scmp.lt.u32.totalorder %s302_s25, %s412_s5 }
 0x24a   :  { %p308_p9 = pnand %p306_p8, %p303_p7 }
 0x24c   :  { %311 = shalt.err (!%p308_p9)
}
 0x24d   :  { %200 = dma.vmem_to_hbm [thread:$0]  %s195_s23, 256, %s412_s5, [#allocation4], %s319_s28, %s319_s28, %s320_s29  }
 0x24e   :  { %316 = dma.done.wait [#allocation4], 256  }
 0x24f   :  { %317 = vsyncadd [#allocation4], 4294967040 }
 0x250   :  { %204 = vsyncpa [#allocation3], 1 }
 0x251   :  { %205 = vsyncpa [#allocation6], 1 }
 0x252   :  { %206 = vsyncpa [#allocation4], 1 }

</bundles_post_ra>
